<compile_context>
chip_gen: v6e
topology: v6e:2x2x1
jax: 0.10.0
libtpu: 0.0.40
codegen_flags: <defaults>
</compile_context>

<pallas_src>
import functools

import jax
import jax.numpy as jnp
from jax.experimental import pallas as pl
from jax.experimental.pallas import tpu as pltpu


LANE = 128                       # vreg lane width
SMALL_N = 512                    # fully-fused single-kernel path when n <= SMALL_N
NODE_TILE_M = 512                # row tile (multiple of 128 and 256)
NODE_TILE_K_MAX = 2048           # contraction tile upper bound
VMEM_LIMIT = 32 * 1024 * 1024    # safe on v5e/v6e/v7x; our tiles use far less


def _round_up(x, m):
    return ((x + m - 1) // m) * m


# --------------------- kernel 1: feature-side transform ----------------------
# zw1 = x @ W1   (row-tiled; tiny compared to the A_hat aggregations)
def feat_kernel(x_ref, w_ref, zw_ref):
    zw_ref[...] = jnp.dot(
        x_ref[...], w_ref[...], preferred_element_type=jnp.float32
    ).astype(zw_ref.dtype)


def feature_transform(x, w, *, tm):
    npad, fpad = x.shape
    hpad = w.shape[1]
    return pl.pallas_call(
        feat_kernel,
        out_shape=jax.ShapeDtypeStruct((npad, hpad), jnp.bfloat16),
        grid_spec=pltpu.PrefetchScalarGridSpec(
            num_scalar_prefetch=0,
            grid=(npad // tm,),
            in_specs=[pl.BlockSpec((tm, fpad), lambda i: (i, 0)),
                      pl.BlockSpec((fpad, hpad), lambda i: (0, 0))],
            out_specs=pl.BlockSpec((tm, hpad), lambda i: (i, 0)),
        ),
        compiler_params=pltpu.CompilerParams(
            dimension_semantics=("parallel",),
            vmem_limit_bytes=VMEM_LIMIT),
        cost_estimate=pl.CostEstimate(
            flops=2 * npad * fpad * hpad, transcendentals=0,
            bytes_accessed=2 * (npad * fpad + fpad * hpad + npad * hpad)),
    )(x, w)


# ------------- kernel 2: layer-1 aggregation fused with W2 matmul ------------
# zw2 = relu(A_hat @ zw1 + b1) @ W2   (h1 is never materialized in HBM)
def gcn1_kernel(a_ref, zw1_ref, b1_ref, w2_ref, zw2_ref, acc_ref, *, tk):
    k = pl.program_id(1)

    @pl.when(k == 0)
    def _():
        acc_ref[...] = jnp.zeros_like(acc_ref)

    off = pl.multiple_of(k * tk, tk)
    acc_ref[...] += jnp.dot(a_ref[...], zw1_ref[pl.ds(off, tk), :],
                            preferred_element_type=jnp.float32)

    @pl.when(k == pl.num_programs(1) - 1)
    def _():
        h1 = jnp.maximum(acc_ref[...] + b1_ref[...], 0.0).astype(jnp.bfloat16)
        zw2_ref[...] = jnp.dot(
            h1, w2_ref[...], preferred_element_type=jnp.float32
        ).astype(zw2_ref.dtype)


def gcn_layer1(a_hat, zw1, b1, w2, *, tm, tk):
    npad = a_hat.shape[0]
    hpad = zw1.shape[1]
    kernel = functools.partial(gcn1_kernel, tk=tk)
    flops = 2 * npad * npad * hpad + 2 * npad * hpad * hpad
    bytes_accessed = (npad * npad * 2        # A_hat (bf16), dominant term
                      + npad * hpad * 2      # zw1 (bf16, read once - resident)
                      + hpad * hpad * 2      # W2 (bf16, resident)
                      + npad * hpad * 2      # zw2 out (bf16)
                      + hpad * 4)            # bias
    # TODO(synk): for very large graphs (npad > ~48K) the resident zw1 block
    # should fall back to a blocked (tk, hpad) spec to stay inside VMEM.
    return pl.pallas_call(
        kernel,
        out_shape=jax.ShapeDtypeStruct((npad, hpad), jnp.bfloat16),
        grid_spec=pltpu.PrefetchScalarGridSpec(
            num_scalar_prefetch=0,
            grid=(npad // tm, npad // tk),
            in_specs=[
                pl.BlockSpec((tm, tk), lambda i, k: (i, k)),
                pl.BlockSpec((npad, hpad), lambda i, k: (0, 0)),   # resident zw1
                pl.BlockSpec((1, hpad), lambda i, k: (0, 0)),
                pl.BlockSpec((hpad, hpad), lambda i, k: (0, 0)),   # resident W2
            ],
            out_specs=pl.BlockSpec((tm, hpad), lambda i, k: (i, 0)),
            scratch_shapes=[pltpu.VMEM((tm, hpad), jnp.float32)],
        ),
        compiler_params=pltpu.CompilerParams(
            dimension_semantics=("parallel", "arbitrary"),
            vmem_limit_bytes=VMEM_LIMIT),
        cost_estimate=pl.CostEstimate(flops=flops, transcendentals=0,
                                      bytes_accessed=bytes_accessed),
    )(a_hat, zw1, b1, w2)


# ------------- kernel 3: layer-2 aggregation fused with mean-pool ------------
# per-row-tile partial pool sums of h2 = relu(A_hat @ zw2 + b2); h2 is never
# written to HBM.
def gcn2_pool_kernel(a_ref, zw2_ref, b2_ref, psum_ref, acc_ref, *, tk):
    k = pl.program_id(1)

    @pl.when(k == 0)
    def _():
        acc_ref[...] = jnp.zeros_like(acc_ref)

    off = pl.multiple_of(k * tk, tk)
    acc_ref[...] += jnp.dot(a_ref[...], zw2_ref[pl.ds(off, tk), :],
                            preferred_element_type=jnp.float32)

    @pl.when(k == pl.num_programs(1) - 1)
    def _():
        h2 = jnp.maximum(acc_ref[...] + b2_ref[...], 0.0)       # (tm, hpad) f32
        # Emit the per-row-tile pool sum as a full (8, hpad) sublane block
        # (unmasked store) holding tile_sum/8 in every row; /8 is a power of
        # two so the wrapper's sum over the 8 rows reproduces tile_sum exactly.
        # Per-tile partials keep the row axis "parallel" (no shared-accumulator
        # race across v7x's two TensorCores).
        tile_sum = jnp.sum(h2, axis=0, keepdims=True)            # (1, hpad)
        psum_ref[...] = jnp.broadcast_to(tile_sum * 0.125, psum_ref.shape)


def gcn_layer2_pool(a_hat, zw2, b2, *, tm, tk):
    npad = a_hat.shape[0]
    hpad = zw2.shape[1]
    n_row_tiles = npad // tm
    kernel = functools.partial(gcn2_pool_kernel, tk=tk)
    flops = 2 * npad * npad * hpad
    bytes_accessed = (npad * npad * 2                 # A_hat (bf16)
                      + npad * hpad * 2               # zw2 (bf16, resident)
                      + n_row_tiles * 8 * hpad * 4    # partial pool sums (f32)
                      + hpad * 4)                     # bias
    return pl.pallas_call(
        kernel,
        out_shape=jax.ShapeDtypeStruct((n_row_tiles * 8, hpad), jnp.float32),
        grid_spec=pltpu.PrefetchScalarGridSpec(
            num_scalar_prefetch=0,
            grid=(n_row_tiles, npad // tk),
            in_specs=[
                pl.BlockSpec((tm, tk), lambda i, k: (i, k)),
                pl.BlockSpec((npad, hpad), lambda i, k: (0, 0)),   # resident zw2
                pl.BlockSpec((1, hpad), lambda i, k: (0, 0)),
            ],
            out_specs=pl.BlockSpec((8, hpad), lambda i, k: (i, 0)),
            scratch_shapes=[pltpu.VMEM((tm, hpad), jnp.float32)],
        ),
        compiler_params=pltpu.CompilerParams(
            dimension_semantics=("parallel", "arbitrary"),
            vmem_limit_bytes=VMEM_LIMIT),
        cost_estimate=pl.CostEstimate(flops=flops, transcendentals=0,
                                      bytes_accessed=bytes_accessed),
    )(a_hat, zw2, b2)


# --------------- kernel 4: fully-fused forward for small graphs --------------
def fused_small_kernel(a_ref, x_ref, w1_ref, b1_ref, w2_ref, b2_ref,
                       wl_ref, bl_ref, y_ref, *, n_real, n_pad):
    bf = jnp.bfloat16
    zw1 = jnp.dot(x_ref[...], w1_ref[...],
                  preferred_element_type=jnp.float32).astype(bf)
    h1 = jnp.maximum(
        jnp.dot(a_ref[...], zw1, preferred_element_type=jnp.float32)
        + b1_ref[...], 0.0).astype(bf)
    zw2 = jnp.dot(h1, w2_ref[...],
                  preferred_element_type=jnp.float32).astype(bf)
    h2 = jnp.maximum(
        jnp.dot(a_ref[...], zw2, preferred_element_type=jnp.float32)
        + b2_ref[...], 0.0)
    # Padded node rows of h2 equal relu(b2) exactly (their A_hat rows are 0);
    # remove their pool contribution analytically instead of an iota mask.
    total = jnp.sum(h2, axis=0, keepdims=True)
    total = total - float(n_pad - n_real) * jnp.maximum(b2_ref[...], 0.0)
    pooled = (total * (1.0 / float(n_real))).astype(bf)
    y_ref[...] = (jnp.dot(pooled, wl_ref[...],
                          preferred_element_type=jnp.float32) + bl_ref[...])


def fused_small_forward(a_p, x_p, w1_p, b1_p, w2_p, b2_p, wl_p, bl_p,
                        *, n_real, n_pad, cpad):
    kernel = functools.partial(fused_small_kernel, n_real=n_real, n_pad=n_pad)
    return pl.pallas_call(
        kernel,
        out_shape=jax.ShapeDtypeStruct((1, cpad), jnp.float32),
        compiler_params=pltpu.CompilerParams(vmem_limit_bytes=VMEM_LIMIT),
    )(a_p, x_p, w1_p, b1_p, w2_p, b2_p, wl_p, bl_p)


# ------------------------------ full forward ---------------------------------
def simple_gnn_forward(ahat, x, w1, b1, w2, b2, wl, bl):
    n, f = x.shape
    h_dim = w1.shape[1]
    c = wl.shape[1]

    bf = jnp.bfloat16
    fpad = _round_up(f, LANE)
    hpad = _round_up(h_dim, LANE)
    cpad = _round_up(c, LANE)

    if n <= SMALL_N:
        # Lane dim of A_hat is npad -> keep it a multiple of 128 (no vst.msk).
        npad = _round_up(n, LANE)
        tm = tk = None
    else:
        # TODO(synk): on v7x (2 TensorCores) prefer an even number of row tiles
        # (npad // tm even) to avoid idling one core on small tiled graphs.
        npad = _round_up(n, NODE_TILE_M)
        tm = NODE_TILE_M
        tk = NODE_TILE_K_MAX
        while npad % tk:
            tk //= 2

    # Pad & cast directly in bf16 (no f32 (npad, npad) intermediate pass).
    a_p = jnp.zeros((npad, npad), bf).at[:n, :n].set(ahat.astype(bf))
    x_p = jnp.zeros((npad, fpad), bf).at[:n, :f].set(x.astype(bf))
    w1_p = jnp.zeros((fpad, hpad), bf).at[:f, :h_dim].set(w1.astype(bf))
    w2_p = jnp.zeros((hpad, hpad), bf).at[:h_dim, :h_dim].set(w2.astype(bf))
    b1_p = jnp.zeros((1, hpad), jnp.float32).at[:, :h_dim].set(b1)
    b2_p = jnp.zeros((1, hpad), jnp.float32).at[:, :h_dim].set(b2)

    if n <= SMALL_N:
        wl_p = jnp.zeros((hpad, cpad), bf).at[:h_dim, :c].set(wl.astype(bf))
        bl_p = jnp.zeros((1, cpad), jnp.float32).at[:, :c].set(bl)
        y = fused_small_forward(a_p, x_p, w1_p, b1_p, w2_p, b2_p, wl_p, bl_p,
                                n_real=n, n_pad=npad, cpad=cpad)
        return y[:, :c]

    # ---- tiled path for large graphs ----
    zw1 = feature_transform(x_p, w1_p, tm=tm)                  # x @ W1
    zw2 = gcn_layer1(a_p, zw1, b1_p, w2_p, tm=tm, tk=tk)       # relu(A zw1+b1) W2
    psums = gcn_layer2_pool(a_p, zw2, b2_p, tm=tm, tk=tk)      # partial pools
    total = jnp.sum(psums, axis=0, keepdims=True)              # (1, hpad)
    # Remove padded-row contributions (each padded h2 row equals relu(b2)).
    total = total - float(npad - n) * jnp.maximum(b2_p, 0.0)
    pooled = total[:, :h_dim] / float(n)                       # (1, H) f32
    # Final Linear is a tiny (1,H)@(H,C) op; done in the wrapper (f32).
    return pooled @ wl + bl


# ------------------------------ glue (plain JAX) -----------------------------
def build_normalized_adjacency(edge_index, num_nodes):
    """Dense A_hat = D^{-1/2} (A + I) D^{-1/2}, matching PyG GCNConv norm."""
    src = edge_index[0]
    dst = edge_index[1]
    a = jnp.zeros((num_nodes, num_nodes), jnp.float32)
    a = a.at[dst, src].add(1.0)                            # message src -> dst
    a = a + jnp.eye(num_nodes, dtype=jnp.float32)          # add self loops
    deg = jnp.sum(a, axis=1)
    dinv = jnp.where(deg > 0, 1.0 / jnp.sqrt(deg), 0.0)
    return dinv[:, None] * a * dinv[None, :]
    # TODO(synk): for genuinely sparse graphs, replace this dense O(N^2) A_hat
    # with a scalar-prefetch / CSR gather formulation.


def init_params(key, num_features, hidden, num_classes):
    ks = jax.random.split(key, 6)
    w1 = jax.random.normal(ks[0], (num_features, hidden), jnp.float32) * 0.2
    b1 = jax.random.normal(ks[1], (1, hidden), jnp.float32) * 0.05
    w2 = jax.random.normal(ks[2], (hidden, hidden), jnp.float32) * 0.2
    b2 = jax.random.normal(ks[3], (1, hidden), jnp.float32) * 0.05
    # torch.nn.Linear weight is (C, H); we store the transpose (H, C).
    wl = jax.random.normal(ks[4], (hidden, num_classes), jnp.float32) * 0.2
    bl = jax.random.normal(ks[5], (1, num_classes), jnp.float32) * 0.05
    return w1, b1, w2, b2, wl, bl


def reference_forward(ahat, x, w1, b1, w2, b2, wl, bl):
    h = jnp.maximum(ahat @ (x @ w1) + b1, 0.0)
    h = jnp.maximum(ahat @ (h @ w2) + b2, 0.0)
    pooled = jnp.mean(h, axis=0, keepdims=True)
    return pooled @ wl + bl


if __name__ == "__main__":
    def run_case(num_nodes, num_features, hidden, num_classes, num_edges, key):
        k_x, k_e, k_p = jax.random.split(key, 3)
        x = jax.random.normal(k_x, (num_nodes, num_features), jnp.float32)
        edge_index = jax.random.randint(k_e, (2, num_edges), 0, num_nodes,
                                        dtype=jnp.int32)
        params = init_params(k_p, num_features, hidden, num_classes)
        ahat = build_normalized_adjacency(edge_index, num_nodes)

        out = simple_gnn_forward(ahat, x, *params)
        out = jax.block_until_ready(out)

        ref = reference_forward(ahat, x, *params)     # pure-f32 reference
        assert out.shape == (1, num_classes), out.shape
        # bf16 matmul operands with f32 accumulation -> relaxed tolerance.
        assert jnp.allclose(out, ref, atol=3e-2, rtol=3e-2), (out, ref)

    key = jax.random.PRNGKey(0)
    k_small, k_big = jax.random.split(key)
    # Small graph: single fully-fused kernel path.
    run_case(16, 8, 32, 4, 40, k_small)
    # Larger graph: tiled path (npad=1024, tm=512, tk=1024) exercising the
    # resident-zw aggregation kernels and the fused pool.
    run_case(700, 8, 32, 4, 3000, k_big)

    print("KERNEL_OK")
</pallas_src>

<mosaic_0001>
module attributes {stable_mosaic.version = 11 : i64} {
  func.func @fused_small_kernel(%arg0: memref<128x128xbf16, #tpu.memory_space<vmem>>, %arg1: memref<128x128xbf16, #tpu.memory_space<vmem>>, %arg2: memref<128x128xbf16, #tpu.memory_space<vmem>>, %arg3: memref<1x128xf32, #tpu.memory_space<vmem>>, %arg4: memref<128x128xbf16, #tpu.memory_space<vmem>>, %arg5: memref<1x128xf32, #tpu.memory_space<vmem>>, %arg6: memref<128x128xbf16, #tpu.memory_space<vmem>>, %arg7: memref<1x128xf32, #tpu.memory_space<vmem>>, %arg8: memref<1x128xf32, #tpu.memory_space<vmem>>) attributes {dimension_semantics = [], scalar_prefetch = 0 : i64, scratch_operands = 0 : i64, tpu.core_type = #tpu.core_type<tc>} {
    %c0 = arith.constant 0 : index
    %c0_0 = arith.constant 0 : index
    %0 = vector.load %arg1[%c0, %c0_0] : memref<128x128xbf16, #tpu.memory_space<vmem>>, vector<128x128xbf16>
    %c0_1 = arith.constant 0 : index
    %c0_2 = arith.constant 0 : index
    %1 = vector.load %arg2[%c0_1, %c0_2] : memref<128x128xbf16, #tpu.memory_space<vmem>>, vector<128x128xbf16>
    %cst = arith.constant dense<0.000000e+00> : vector<128x128xf32>
    %2 = tpu.matmul %0, %1, %cst {dimension_numbers = #tpu.dot_dimension_numbers<[1], [0], [0], [1], [0, 0, 1, 1], [], []>} : vector<128x128xbf16>, vector<128x128xbf16>, vector<128x128xf32> -> vector<128x128xf32>
    %3 = arith.truncf %2 : vector<128x128xf32> to vector<128x128xbf16>
    %c0_3 = arith.constant 0 : index
    %c0_4 = arith.constant 0 : index
    %4 = vector.load %arg0[%c0_3, %c0_4] : memref<128x128xbf16, #tpu.memory_space<vmem>>, vector<128x128xbf16>
    %cst_5 = arith.constant dense<0.000000e+00> : vector<128x128xf32>
    %5 = tpu.matmul %4, %3, %cst_5 {dimension_numbers = #tpu.dot_dimension_numbers<[1], [0], [0], [1], [0, 0, 1, 1], [], []>} : vector<128x128xbf16>, vector<128x128xbf16>, vector<128x128xf32> -> vector<128x128xf32>
    %c0_6 = arith.constant 0 : index
    %c0_7 = arith.constant 0 : index
    %6 = vector.load %arg3[%c0_6, %c0_7] : memref<1x128xf32, #tpu.memory_space<vmem>>, vector<1x128xf32>
    %7 = vector.broadcast %6 : vector<1x128xf32> to vector<128x128xf32>
    %8 = arith.addf %5, %7 : vector<128x128xf32>
    %cst_8 = arith.constant 0.000000e+00 : f32
    %9 = vector.broadcast %cst_8 : f32 to vector<128x128xf32>
    %10 = arith.maximumf %8, %9 : vector<128x128xf32>
    %11 = arith.truncf %10 : vector<128x128xf32> to vector<128x128xbf16>
    %c0_9 = arith.constant 0 : index
    %c0_10 = arith.constant 0 : index
    %12 = vector.load %arg4[%c0_9, %c0_10] : memref<128x128xbf16, #tpu.memory_space<vmem>>, vector<128x128xbf16>
    %cst_11 = arith.constant dense<0.000000e+00> : vector<128x128xf32>
    %13 = tpu.matmul %11, %12, %cst_11 {dimension_numbers = #tpu.dot_dimension_numbers<[1], [0], [0], [1], [0, 0, 1, 1], [], []>} : vector<128x128xbf16>, vector<128x128xbf16>, vector<128x128xf32> -> vector<128x128xf32>
    %14 = arith.truncf %13 : vector<128x128xf32> to vector<128x128xbf16>
    %c0_12 = arith.constant 0 : index
    %c0_13 = arith.constant 0 : index
    %15 = vector.load %arg0[%c0_12, %c0_13] : memref<128x128xbf16, #tpu.memory_space<vmem>>, vector<128x128xbf16>
    %cst_14 = arith.constant dense<0.000000e+00> : vector<128x128xf32>
    %16 = tpu.matmul %15, %14, %cst_14 {dimension_numbers = #tpu.dot_dimension_numbers<[1], [0], [0], [1], [0, 0, 1, 1], [], []>} : vector<128x128xbf16>, vector<128x128xbf16>, vector<128x128xf32> -> vector<128x128xf32>
    %c0_15 = arith.constant 0 : index
    %c0_16 = arith.constant 0 : index
    %17 = vector.load %arg5[%c0_15, %c0_16] : memref<1x128xf32, #tpu.memory_space<vmem>>, vector<1x128xf32>
    %18 = vector.broadcast %17 : vector<1x128xf32> to vector<128x128xf32>
    %19 = arith.addf %16, %18 : vector<128x128xf32>
    %cst_17 = arith.constant 0.000000e+00 : f32
    %20 = vector.broadcast %cst_17 : f32 to vector<128x128xf32>
    %21 = arith.maximumf %19, %20 : vector<128x128xf32>
    %cst_18 = arith.constant dense<0.000000e+00> : vector<128xf32>
    %22 = vector.multi_reduction <add>, %21, %cst_18 [0] : vector<128x128xf32> to vector<128xf32>
    %23 = vector.shape_cast %22 : vector<128xf32> to vector<1x128xf32>
    %c0_19 = arith.constant 0 : index
    %c0_20 = arith.constant 0 : index
    %24 = vector.load %arg5[%c0_19, %c0_20] : memref<1x128xf32, #tpu.memory_space<vmem>>, vector<1x128xf32>
    %cst_21 = arith.constant 0.000000e+00 : f32
    %25 = vector.broadcast %cst_21 : f32 to vector<1x128xf32>
    %26 = arith.maximumf %24, %25 : vector<1x128xf32>
    %cst_22 = arith.constant 1.120000e+02 : f32
    %27 = vector.broadcast %cst_22 : f32 to vector<1x128xf32>
    %28 = arith.mulf %27, %26 : vector<1x128xf32>
    %29 = arith.subf %23, %28 : vector<1x128xf32>
    %cst_23 = arith.constant 6.250000e-02 : f32
    %30 = vector.broadcast %cst_23 : f32 to vector<1x128xf32>
    %31 = arith.mulf %29, %30 : vector<1x128xf32>
    %32 = arith.truncf %31 : vector<1x128xf32> to vector<1x128xbf16>
    %c0_24 = arith.constant 0 : index
    %c0_25 = arith.constant 0 : index
    %33 = vector.load %arg6[%c0_24, %c0_25] : memref<128x128xbf16, #tpu.memory_space<vmem>>, vector<128x128xbf16>
    %cst_26 = arith.constant dense<0.000000e+00> : vector<1x128xf32>
    %34 = tpu.matmul %32, %33, %cst_26 {dimension_numbers = #tpu.dot_dimension_numbers<[1], [0], [0], [1], [0, 0, 1, 1], [], []>} : vector<1x128xbf16>, vector<128x128xbf16>, vector<1x128xf32> -> vector<1x128xf32>
    %c0_27 = arith.constant 0 : index
    %c0_28 = arith.constant 0 : index
    %35 = vector.load %arg7[%c0_27, %c0_28] : memref<1x128xf32, #tpu.memory_space<vmem>>, vector<1x128xf32>
    %36 = arith.addf %34, %35 : vector<1x128xf32>
    %c0_29 = arith.constant 0 : index
    %c0_30 = arith.constant 0 : index
    %37 = vector.load %arg8[%c0_29, %c0_30] : memref<1x128xf32, #tpu.memory_space<vmem>>, vector<1x128xf32>
    tpu.vector_store %arg8[%c0_29, %c0_30], %36 {strides = array<i32>} : memref<1x128xf32, #tpu.memory_space<vmem>>, vector<1x128xf32>,
    return
  }
}

</mosaic_0001>

<bundles_post_ra>
// kernel: tpu_custom_call.1
= control target key start
LH: loop header
LB: loop body
LE: loop exit
PB: predicated region body
PF: predicated region fallthrough
CT: control target
= control target key end

     0   :  { %13 = vsyncpa [#allocation3], 0  ;;  %s1535_s0 = inlined_call_operand.hbm [shape: bf16[128,128], index: 0, kind: input, shape index: {}]   ;;  %s1536_s1 = inlined_call_operand.hbm [shape: bf16[128,128], index: 1, kind: input, shape index: {}]   ;;  %s1537_s2 = inlined_call_operand.hbm [shape: bf16[128,128], index: 2, kind: input, shape index: {}]   ;;  %s1538_s3 = inlined_call_operand.vmem [shape: f32[1,128], index: 3, kind: input, shape index: {}]   ;;  %s1539_s4 = inlined_call_operand.hbm [shape: bf16[128,128], index: 4, kind: input, shape index: {}]   ;;  %s1540_s5 = inlined_call_operand.vmem [shape: f32[1,128], index: 5, kind: input, shape index: {}]   ;;  %s1541_s6 = inlined_call_operand.hbm [shape: bf16[128,128], index: 6, kind: input, shape index: {}]   ;;  %s1542_s7 = inlined_call_operand.vmem [shape: f32[1,128], index: 7, kind: input, shape index: {}]   ;;  %s1543_s8 = inlined_call_operand.hbm [shape: f32[1,128], index: 8, kind: output, shape index: {}]  }
   0x1   :  { %14 = vsyncpa [#allocation6], 0 }
   0x2   :  { %15 = vsyncpa [#allocation9], 0 }
   0x3   :  { %16 = vsyncpa [#allocation4], 0  ;;  %s1402_s27 = smov [#allocation5]   ;;  %s1403_s29 = smov [#allocation8]  }
   0x4   :  { %s34_s28 = sshll.u32 %s1402_s27, 4  ;;  %s60_s30 = sshll.u32 %s1403_s29, 4  ;;  %s35_s28 = int_to_ptr.vmem [resolvable:$true] %s34_s28  ;;  %s61_s30 = int_to_ptr.vmem [resolvable:$true] %s60_s30 }
   0x5   :  { %s1282_s9 = scalar_lea.vmem %s35_s28, 1024  ;;  %p1287_p1 = scmp.lt.s32.totalorder %s35_s28, %s35_s28 }
   0x6   :  { %p1283_p0 = scmp.ne.s32.totalorder %s35_s28, %s1282_s9  ;;  %p1288_p2 = scmp.lt.s32.totalorder %s1282_s9, %s1282_s9 }
   0x8   :  { %p1289_p3 = por %p1288_p2, %p1287_p1 }
   0xa   :  { %p1290_p4 = pnand %p1289_p3, %p1283_p0 }
   0xc   :  { %1293 = shalt.err (!%p1290_p4)
}
   0xd   :  { %s1404_s10 = smov 64   ;;  %s1405_s11 = smov 4  }
   0xe   :  { %40 = dma.hbm_to_vmem [thread:$0]  %s1536_s1, 1024, %s35_s28, [#allocation6], %s1404_s10, %s1404_s10, %s1405_s11  }
   0xf   :  { %s1302_s14 = scalar_lea.vmem %s61_s30, 1024  ;;  %p1307_p6 = scmp.lt.s32.totalorder %s61_s30, %s61_s30 }
  0x10   :  { %p1303_p5 = scmp.ne.s32.totalorder %s61_s30, %s1302_s14  ;;  %p1308_p7 = scmp.lt.s32.totalorder %s1302_s14, %s1302_s14 }
  0x12   :  { %p1309_p8 = por %p1308_p7, %p1307_p6 }
  0x14   :  { %p1310_p9 = pnand %p1309_p8, %p1303_p5 }
  0x16   :  { %1313 = shalt.err (!%p1310_p9)
}
  0x17   :  { %66 = dma.hbm_to_vmem [thread:$0]  %s1539_s4, 1024, %s61_s30, [#allocation9], %s1404_s10, %s1404_s10, %s1405_s11  }
  0x18   :  { %s1406_s17 = smov [#allocation2]   ;;  %s1407_s19 = smov [#allocation7]  }
  0x19   :  { %s22_s18 = sshll.u32 %s1406_s17, 4  ;;  %s46_s20 = sshll.u32 %s1407_s19, 4  ;;  %s23_s18 = int_to_ptr.vmem [resolvable:$true] %s22_s18  ;;  %s47_s20 = int_to_ptr.vmem [resolvable:$true] %s46_s20 }
  0x1a   :  { %s1322_s1 = scalar_lea.vmem %s23_s18, 1024  ;;  %p1327_p11 = scmp.lt.s32.totalorder %s23_s18, %s23_s18 }
  0x1b   :  { %p1323_p10 = scmp.ne.s32.totalorder %s23_s18, %s1322_s1  ;;  %p1328_p12 = scmp.lt.s32.totalorder %s1322_s1, %s1322_s1 }
  0x1d   :  { %p1329_p13 = por %p1328_p12, %p1327_p11 }
  0x1f   :  { %p1330_p0 = pnand %p1329_p13, %p1323_p10 }
  0x21   :  { %1333 = shalt.err (!%p1330_p0)
}
  0x22   :  { %28 = dma.hbm_to_vmem [thread:$0]  %s1535_s0, 1024, %s23_s18, [#allocation3], %s1404_s10, %s1404_s10, %s1405_s11  }
  0x23   :  { %s1342_s4 = scalar_lea.vmem %s47_s20, 1024  ;;  %p1347_p2 = scmp.lt.s32.totalorder %s47_s20, %s47_s20 }
  0x24   :  { %p1343_p1 = scmp.ne.s32.totalorder %s47_s20, %s1342_s4  ;;  %p1348_p3 = scmp.lt.s32.totalorder %s1342_s4, %s1342_s4 }
  0x26   :  { %p1349_p4 = por %p1348_p3, %p1347_p2 }
  0x28   :  { %p1350_p5 = pnand %p1349_p4, %p1343_p1 }
  0x2a   :  { %1353 = shalt.err (!%p1350_p5)
}
  0x2b   :  { %52 = dma.hbm_to_vmem [thread:$0]  %s1537_s2, 1024, %s47_s20, [#allocation6], %s1404_s10, %s1404_s10, %s1405_s11  }
  0x2c   :  { %s1408_s25 = smov [#allocation10]  }
  0x2d   :  { %s74_s26 = sshll.u32 %s1408_s25, 4  ;;  %s75_s26 = int_to_ptr.vmem [resolvable:$true] %s74_s26 }
  0x2e   :  { %s1362_s27 = scalar_lea.vmem %s75_s26, 1024  ;;  %p1367_p7 = scmp.lt.s32.totalorder %s75_s26, %s75_s26 }
  0x2f   :  { %p1363_p6 = scmp.ne.s32.totalorder %s75_s26, %s1362_s27  ;;  %p1368_p8 = scmp.lt.s32.totalorder %s1362_s27, %s1362_s27 }
  0x31   :  { %p1369_p9 = por %p1368_p8, %p1367_p7 }
  0x33   :  { %p1370_p10 = pnand %p1369_p9, %p1363_p6 }
  0x35   :  { %1373 = shalt.err (!%p1370_p10)
}
  0x36   :  { %80 = dma.hbm_to_vmem [thread:$0]  %s1541_s6, 1024, %s75_s26, [#allocation9], %s1404_s10, %s1404_s10, %s1405_s11  }
  0x37   :  { %1394 = dma.done.wait [#allocation3], 1024  }
  0x38   :  { %1395 = vsyncadd [#allocation3], 4294966272 }
  0x39   :  { %1396 = dma.done.wait [#allocation6], 2048  }
  0x3a   :  { %1397 = vsyncadd [#allocation6], 4294965248 }
  0x3b   :  { %1398 = dma.done.wait [#allocation9], 2048  }
  0x3c   :  { %1399 = vsyncadd [#allocation9], 4294965248  ;;  %v1234_v0 = vld [vmem:[#allocation7 + $0x38] sm:$0xff]   ;;  %v1235_v1 = vld [vmem:[#allocation7 + $0x30] sm:$0xff]   ;;  %vm1410_vm0 = vmmov 0   ;;  %s1411_s9 = smov [#allocation11]  }
  0x3d   :  { %1076 = vmatprep.subr.bf16.mxu0 %v1234_v0  ;;  %v1236_v2 = vld [vmem:[#allocation7 + $0x28] sm:$0xff]   ;;  %v1237_v3 = vld [vmem:[#allocation7 + $0x20] sm:$0xff]   ;;  %v1238_v5 = vld [vmem:[#allocation7 + $0x18] sm:$0xff]   ;;  %s951_s10 = sshll.u32 %s1411_s9, 4  ;;  %s952_s10 = int_to_ptr.vmem [resolvable:$true] %s951_s10 }
  0x3e   :  { %1077 = vmatpush3.bf16.msra.mxu0 %v1234_v0  ;;  %v1242_v4 = vld [vmem:[#allocation5] sm:$0xff]   ;;  %v1239_v6 = vld [vmem:[#allocation7 + $0x10] sm:$0xff]   ;;  %v1240_v7 = vld [vmem:[#allocation7 + $0x8] sm:$0xff]   ;;  %s1374_s11 = scalar_lea.vmem %s952_s10, 16  ;;  %s1378_s12 = scalar_lea.vmem %s952_s10, 32 }
  0x3f   :  { %1078 = vmatprep.subr.bf16.mxu0 %v1235_v1  ;;  %1092 = vmatprep.mubr.bf16.mxu0 %v1242_v4  ;;  %v1241_v8 = vld [vmem:[#allocation7] sm:$0xff]   ;;  %v1243_v9 = vld [vmem:[#allocation5 + $0x8] sm:$0xff]   ;;  %v1244_v10 = vld [vmem:[#allocation5 + $0x10] sm:$0xff]   ;;  %p1375_p11 = scmp.ne.s32.totalorder %s952_s10, %s1374_s11  ;;  %p1379_p12 = scmp.lt.s32.totalorder %s952_s10, %s952_s10 }
  0x40   :  { %v1245_v11 = vld [vmem:[#allocation5 + $0x18] sm:$0xff]   ;;  %v1246_v12 = vld [vmem:[#allocation5 + $0x20] sm:$0xff]   ;;  %v1247_v13 = vld [vmem:[#allocation5 + $0x28] sm:$0xff]   ;;  %p1380_p13 = scmp.lt.s32.totalorder %s1378_s12, %s1374_s11 }
  0x41   :  { %v1248_v14 = vld [vmem:[#allocation5 + $0x30] sm:$0xff]   ;;  %v1249_v15 = vld [vmem:[#allocation5 + $0x38] sm:$0xff]   ;;  %v1487_v16 = vld [vmem:[#allocation2] sm:$0xff]  }
  0x42   :  { %1079 = vmatpush3.bf16.msra.mxu0 %v1235_v1  ;;  %1124 = vmatprep.mubr.bf16.mxu1 %v1487_v16  ;;  %v1258_v17 = vld [vmem:[#allocation8 + $0x38] sm:$0xff]   ;;  %v1259_v18 = vld [vmem:[#allocation8 + $0x30] sm:$0xff]   ;;  %v1260_v19 = vld [vmem:[#allocation8 + $0x28] sm:$0xff]   ;;  %p1381_p0 = por %p1380_p13, %p1379_p12 }
  0x43   :  { %1080 = vmatprep.subr.bf16.mxu0 %v1236_v2  ;;  %v1261_v20 = vld [vmem:[#allocation8 + $0x20] sm:$0xff]   ;;  %v1262_v21 = vld [vmem:[#allocation8 + $0x18] sm:$0xff]   ;;  %v1490_v46 = vld [vmem:[#allocation2 + $0x8] sm:$0xff]  }
  0x44   :  { %v1492_v47 = vld [vmem:[#allocation2 + $0x10] sm:$0xff]   ;;  %v1496_v48 = vld [vmem:[#allocation2 + $0x18] sm:$0xff]   ;;  %v1498_v49 = vld [vmem:[#allocation2 + $0x20] sm:$0xff]   ;;  %p1382_p1 = pnand %p1381_p0, %p1375_p11 }
  0x45   :  { %v1502_v50 = vld [vmem:[#allocation2 + $0x28] sm:$0xff]   ;;  %v1504_v51 = vld [vmem:[#allocation2 + $0x30] sm:$0xff]   ;;  %v1508_v52 = vld [vmem:[#allocation2 + $0x38] sm:$0xff]  }
  0x46   :  { %1081 = vmatpush3.bf16.msra.mxu0 %v1236_v2  ;;  %v1263_v53 = vld [vmem:[#allocation8 + $0x10] sm:$0xff]   ;;  %v1264_v54 = vld [vmem:[#allocation8 + $0x8] sm:$0xff]   ;;  %v1265_v55 = vld [vmem:[#allocation8] sm:$0xff]  }
  0x47   :  { %1082 = vmatprep.subr.bf16.mxu0 %v1237_v3  ;;  %v978_v58 = vld [vmem:[%s1538_s3] ss:$0 sm:$0xff] }
  0x4a   :  { %1083 = vmatpush3.bf16.msra.mxu0 %v1237_v3 }
  0x4b   :  { %1084 = vmatprep.subr.bf16.mxu0 %v1238_v5 }
  0x4e   :  { %1085 = vmatpush3.bf16.msra.mxu0 %v1238_v5 }
  0x4f   :  { %1086 = vmatprep.subr.bf16.mxu0 %v1239_v6 }
  0x52   :  { %1087 = vmatpush3.bf16.msra.mxu0 %v1239_v6 }
  0x53   :  { %1088 = vmatprep.subr.bf16.mxu0 %v1240_v7 }
  0x56   :  { %1089 = vmatpush3.bf16.msra.mxu0 %v1240_v7 }
  0x57   :  { %1090 = vmatprep.subr.bf16.mxu0 %v1241_v8 }
  0x5a   :  { %1091 = vmatpush3.bf16.msra.mxu0 %v1241_v8 }
  0x5b   :  { %1140 = vmatprep.subr.bf16.mxu0 %v1258_v17 }
  0x5d   :  { %1093 = vmatmul.mubr.bf16.vlgmr.msra.gmra.mxu0 %v1243_v9 }
  0x5e   :  { %1096 = vmatprep.mubr.bf16.mxu0 %v1244_v10  ;;  %1141 = vmatpush3.bf16.msra.mxu0 %v1258_v17 }
  0x5f   :  { %1142 = vmatprep.subr.bf16.mxu0 %v1259_v18 }
  0x62   :  { %1143 = vmatpush3.bf16.msra.mxu0 %v1259_v18 }
  0x63   :  { %1144 = vmatprep.subr.bf16.mxu0 %v1260_v19 }
  0x65   :  { %1097 = vmatmul.mubr.bf16.gmra.mxu0 %v1245_v11 }
  0x66   :  { %1100 = vmatprep.mubr.bf16.mxu0 %v1246_v12  ;;  %1145 = vmatpush3.bf16.msra.mxu0 %v1260_v19 }
  0x67   :  { %1146 = vmatprep.subr.bf16.mxu0 %v1261_v20 }
  0x6a   :  { %1147 = vmatpush3.bf16.msra.mxu0 %v1261_v20 }
  0x6b   :  { %1148 = vmatprep.subr.bf16.mxu0 %v1262_v21 }
  0x6d   :  { %1101 = vmatmul.mubr.bf16.gmra.mxu0 %v1247_v13 }
  0x6e   :  { %1104 = vmatprep.mubr.bf16.mxu0 %v1248_v14  ;;  %1149 = vmatpush3.bf16.msra.mxu0 %v1262_v21 }
  0x6f   :  { %1150 = vmatprep.subr.bf16.mxu0 %v1263_v53 }
  0x72   :  { %1151 = vmatpush3.bf16.msra.mxu0 %v1263_v53 }
  0x73   :  { %1152 = vmatprep.subr.bf16.mxu0 %v1264_v54 }
  0x75   :  { %1105 = vmatmul.mubr.bf16.gmra.mxu0 %v1249_v15 }
  0x76   :  { %1153 = vmatpush3.bf16.msra.mxu0 %v1264_v54 }
  0x77   :  { %1154 = vmatprep.subr.bf16.mxu0 %v1265_v55 }
  0x7a   :  { %1155 = vmatpush3.bf16.msra.mxu0 %v1265_v55 }
 0x11d   :  { %v1094_v22 = vpop.f32.mrf.mxu0 }
 0x11f   :  { %v261_v23 = vpop.f32.mrf.mxu0 }
 0x121   :  { %v1095_v24 = vpop.f32.mrf.mxu0 }
 0x122   :  { %v325_v44 = vpack.c.bf16 %v1095_v24, %v1094_v22 }
 0x123   :  { %v264_v25 = vpop.f32.mrf.mxu0 }
 0x124   :  { %v324_v45 = vpack.c.bf16 %v264_v25, %v261_v23 }
 0x125   :  { %v1098_v26 = vpop.f32.mrf.mxu0 }
 0x127   :  { %v277_v27 = vpop.f32.mrf.mxu0 }
 0x129   :  { %v1099_v28 = vpop.f32.mrf.mxu0 }
 0x12a   :  { %v327_v42 = vpack.c.bf16 %v1099_v28, %v1098_v26 }
 0x12b   :  { %v280_v29 = vpop.f32.mrf.mxu0 }
 0x12c   :  { %v326_v43 = vpack.c.bf16 %v280_v29, %v277_v27 }
 0x12d   :  { %v1102_v30 = vpop.f32.mrf.mxu0 }
 0x12f   :  { %v293_v31 = vpop.f32.mrf.mxu0 }
 0x131   :  { %v1103_v32 = vpop.f32.mrf.mxu0 }
 0x132   :  { %v329_v40 = vpack.c.bf16 %v1103_v32, %v1102_v30 }
 0x133   :  { %v296_v33 = vpop.f32.mrf.mxu0 }
 0x134   :  { %v328_v41 = vpack.c.bf16 %v296_v33, %v293_v31 }
 0x135   :  { %v1106_v34 = vpop.f32.mrf.mxu0 }
 0x137   :  { %v309_v35 = vpop.f32.mrf.mxu0 }
 0x139   :  { %v1107_v36 = vpop.f32.mrf.mxu0 }
 0x13a   :  { %v331_v37 = vpack.c.bf16 %v1107_v36, %v1106_v34 }
 0x13b   :  { %v312_v38 = vpop.f32.mrf.mxu0 }
 0x13c   :  { %v330_v39 = vpack.c.bf16 %v312_v38, %v309_v35  ;;  %1108 = vmatprep.subr.bf16.mxu1 %v331_v37 }
 0x13d   :  { %1109 = vmatpush3.bf16.msra.mxu1 %v331_v37 }
 0x13e   :  { %1110 = vmatprep.subr.bf16.mxu1 %v330_v39 }
 0x141   :  { %1111 = vmatpush3.bf16.msra.mxu1 %v330_v39 }
 0x142   :  { %1112 = vmatprep.subr.bf16.mxu1 %v329_v40 }
 0x145   :  { %1113 = vmatpush3.bf16.msra.mxu1 %v329_v40 }
 0x146   :  { %1114 = vmatprep.subr.bf16.mxu1 %v328_v41 }
 0x149   :  { %1115 = vmatpush3.bf16.msra.mxu1 %v328_v41 }
 0x14a   :  { %1116 = vmatprep.subr.bf16.mxu1 %v327_v42 }
 0x14d   :  { %1117 = vmatpush3.bf16.msra.mxu1 %v327_v42 }
 0x14e   :  { %1118 = vmatprep.subr.bf16.mxu1 %v326_v43 }
 0x151   :  { %1119 = vmatpush3.bf16.msra.mxu1 %v326_v43 }
 0x152   :  { %1120 = vmatprep.subr.bf16.mxu1 %v325_v44 }
 0x155   :  { %1121 = vmatpush3.bf16.msra.mxu1 %v325_v44 }
 0x156   :  { %1122 = vmatprep.subr.bf16.mxu1 %v324_v45 }
 0x159   :  { %1123 = vmatpush3.bf16.msra.mxu1 %v324_v45 }
 0x15c   :  { %1125 = vmatmul.mubr.bf16.vlgmr.msra.gmra.mxu1 %v1490_v46 }
 0x15d   :  { %1128 = vmatprep.mubr.bf16.mxu1 %v1492_v47 }
 0x164   :  { %1129 = vmatmul.mubr.bf16.gmra.mxu1 %v1496_v48 }
 0x165   :  { %1132 = vmatprep.mubr.bf16.mxu1 %v1498_v49 }
 0x16c   :  { %1133 = vmatmul.mubr.bf16.gmra.mxu1 %v1502_v50 }
 0x16d   :  { %1136 = vmatprep.mubr.bf16.mxu1 %v1504_v51 }
 0x174   :  { %1137 = vmatmul.mubr.bf16.gmra.mxu1 %v1508_v52 }
 0x175   :  { %1188 = vmatprep.mubr.bf16.mxu1 %v1487_v16 }
 0x21c   :  { %v1126_v56 = vpop.f32.mrf.mxu1 }
 0x21d   :  { %v446_v62 = vadd.f32 %v1126_v56, %v978_v58 }
 0x21e   :  { %v437_v57 = vpop.f32.mrf.mxu1 }
 0x21f   :  { %v438_v60 = vadd.f32 %v978_v58, %v437_v57  ;;  %v502_v5 = vmax.f32 %v446_v62, 0.0 }
 0x220   :  { %v1127_v59 = vpop.f32.mrf.mxu1 }
 0x221   :  { %v449_v61 = vadd.f32 %v1127_v59, %v978_v58  ;;  %v500_v3 = vmax.f32 %v438_v60, 0.0 }
 0x222   :  { %v440_v63 = vpop.f32.mrf.mxu1 }
 0x223   :  { %v441_v0 = vadd.f32 %v978_v58, %v440_v63  ;;  %v503_v1 = vmax.f32 %v449_v61, 0.0 }
 0x224   :  { %v1130_v2 = vpop.f32.mrf.mxu1 }
 0x225   :  { %v501_v4 = vmax.f32 %v441_v0, 0.0  ;;  %v517_v8 = vpack.c.bf16 %v503_v1, %v502_v5  ;;  %v462_v12 = vadd.f32 %v1130_v2, %v978_v58 }
 0x226   :  { %v453_v6 = vpop.f32.mrf.mxu1 }
 0x227   :  { %v516_v7 = vpack.c.bf16 %v501_v4, %v500_v3  ;;  %v454_v10 = vadd.f32 %v978_v58, %v453_v6  ;;  %v506_v19 = vmax.f32 %v462_v12, 0.0 }
 0x228   :  { %v1131_v9 = vpop.f32.mrf.mxu1 }
 0x229   :  { %v465_v11 = vadd.f32 %v1131_v9, %v978_v58  ;;  %1156 = vmatprep.mubr.bf16.mxu0 %v516_v7  ;;  %v504_v17 = vmax.f32 %v454_v10, 0.0 }
 0x22a   :  { %v456_v13 = vpop.f32.mrf.mxu1  ;;  %1157 = vmatmul.mubr.bf16.vlgmr.msra.gmra.mxu0 %v517_v8 }
 0x22b   :  { %v457_v14 = vadd.f32 %v978_v58, %v456_v13  ;;  %v507_v15 = vmax.f32 %v465_v11, 0.0 }
 0x22c   :  { %v1134_v16 = vpop.f32.mrf.mxu1 }
 0x22d   :  { %v505_v18 = vmax.f32 %v457_v14, 0.0  ;;  %v519_v22 = vpack.c.bf16 %v507_v15, %v506_v19  ;;  %v478_v26 = vadd.f32 %v1134_v16, %v978_v58  ;;  %v1266_v16 = vld [vmem:[#allocation10 + $0x38] sm:$0xff]  }
 0x22e   :  { %v469_v20 = vpop.f32.mrf.mxu1 }
 0x22f   :  { %v518_v21 = vpack.c.bf16 %v505_v18, %v504_v17  ;;  %v470_v24 = vadd.f32 %v978_v58, %v469_v20  ;;  %v510_v33 = vmax.f32 %v478_v26, 0.0  ;;  %v1409_v17 = vmov 0.0   ;;  %v1267_v18 = vld [vmem:[#allocation10 + $0x30] sm:$0xff]  }
 0x230   :  { %v1135_v23 = vpop.f32.mrf.mxu1  ;;  %1204 = vmatprep.subr.bf16.mxu0 %v1409_v17 }
 0x231   :  { %v481_v25 = vadd.f32 %v1135_v23, %v978_v58  ;;  %1160 = vmatprep.mubr.bf16.mxu0 %v518_v21  ;;  %v508_v31 = vmax.f32 %v470_v24, 0.0  ;;  %1205 = vmatpush3.bf16.msra.mxu0 %v1266_v16  ;;  %v1525_v21 = vld [vmem:[%s1540_s5] sm:$0x1] }
 0x232   :  { %v472_v27 = vpop.f32.mrf.mxu1  ;;  %1161 = vmatmul.mubr.bf16.gmra.mxu0 %v519_v22  ;;  %1206 = vmatprep.subr.bf16.mxu0 %v1409_v17 }
 0x233   :  { %v473_v28 = vadd.f32 %v978_v58, %v472_v27  ;;  %v511_v29 = vmax.f32 %v481_v25, 0.0 }
 0x234   :  { %v1138_v30 = vpop.f32.mrf.mxu1 }
 0x235   :  { %v509_v32 = vmax.f32 %v473_v28, 0.0  ;;  %v521_v36 = vpack.c.bf16 %v511_v29, %v510_v33  ;;  %v494_v40 = vadd.f32 %v1138_v30, %v978_v58  ;;  %1207 = vmatpush3.bf16.msra.mxu0 %v1267_v18 }
 0x236   :  { %v485_v34 = vpop.f32.mrf.mxu1  ;;  %1208 = vmatprep.subr.bf16.mxu0 %v1409_v17 }
 0x237   :  { %v520_v35 = vpack.c.bf16 %v509_v32, %v508_v31  ;;  %v486_v38 = vadd.f32 %v978_v58, %v485_v34  ;;  %v514_v53 = vmax.f32 %v494_v40, 0.0 }
 0x238   :  { %v1139_v37 = vpop.f32.mrf.mxu1 }
 0x239   :  { %v497_v39 = vadd.f32 %v1139_v37, %v978_v58  ;;  %1164 = vmatprep.mubr.bf16.mxu0 %v520_v35  ;;  %v512_v44 = vmax.f32 %v486_v38, 0.0 }
 0x23a   :  { %v488_v41 = vpop.f32.mrf.mxu1  ;;  %1165 = vmatmul.mubr.bf16.gmra.mxu0 %v521_v36 }
 0x23b   :  { %v489_v42 = vadd.f32 %v978_v58, %v488_v41  ;;  %v515_v43 = vmax.f32 %v497_v39, 0.0 }
 0x23d   :  { %v513_v45 = vmax.f32 %v489_v42, 0.0  ;;  %v523_v55 = vpack.c.bf16 %v515_v43, %v514_v53 }
 0x23f   :  { %v522_v54 = vpack.c.bf16 %v513_v45, %v512_v44 }
 0x241   :  { %1168 = vmatprep.mubr.bf16.mxu0 %v522_v54 }
 0x242   :  { %1169 = vmatmul.mubr.bf16.gmra.mxu0 %v523_v55 }
 0x243   :  { %1220 = vmatprep.mubr.msk.bf16.mxu0 %vm1410_vm0, %v1409_v17 }
 0x2ea   :  { %v1158_v56 = vpop.f32.mrf.mxu0 }
 0x2ec   :  { %v622_v57 = vpop.f32.mrf.mxu0 }
 0x2ee   :  { %v1159_v59 = vpop.f32.mrf.mxu0 }
 0x2ef   :  { %v686_v14 = vpack.c.bf16 %v1159_v59, %v1158_v56 }
 0x2f0   :  { %v625_v60 = vpop.f32.mrf.mxu0 }
 0x2f1   :  { %v685_v15 = vpack.c.bf16 %v625_v60, %v622_v57 }
 0x2f2   :  { %v1162_v61 = vpop.f32.mrf.mxu0 }
 0x2f4   :  { %v638_v62 = vpop.f32.mrf.mxu0 }
 0x2f6   :  { %v1163_v63 = vpop.f32.mrf.mxu0 }
 0x2f7   :  { %v688_v12 = vpack.c.bf16 %v1163_v63, %v1162_v61 }
 0x2f8   :  { %v641_v0 = vpop.f32.mrf.mxu0 }
 0x2f9   :  { %v687_v13 = vpack.c.bf16 %v641_v0, %v638_v62 }
 0x2fa   :  { %v1166_v1 = vpop.f32.mrf.mxu0 }
 0x2fc   :  { %v654_v2 = vpop.f32.mrf.mxu0 }
 0x2fe   :  { %v1167_v3 = vpop.f32.mrf.mxu0 }
 0x2ff   :  { %v690_v10 = vpack.c.bf16 %v1167_v3, %v1166_v1 }
 0x300   :  { %v657_v58 = vpop.f32.mrf.mxu0 }
 0x301   :  { %v689_v11 = vpack.c.bf16 %v657_v58, %v654_v2 }
 0x302   :  { %v1170_v4 = vpop.f32.mrf.mxu0 }
 0x304   :  { %v670_v5 = vpop.f32.mrf.mxu0 }
 0x306   :  { %v1171_v6 = vpop.f32.mrf.mxu0 }
 0x307   :  { %v692_v7 = vpack.c.bf16 %v1171_v6, %v1170_v4 }
 0x308   :  { %v673_v8 = vpop.f32.mrf.mxu0 }
 0x309   :  { %v691_v9 = vpack.c.bf16 %v673_v8, %v670_v5  ;;  %1172 = vmatprep.subr.bf16.mxu1 %v692_v7 }
 0x30a   :  { %1173 = vmatpush3.bf16.msra.mxu1 %v692_v7 }
 0x30b   :  { %1174 = vmatprep.subr.bf16.mxu1 %v691_v9 }
 0x30e   :  { %1175 = vmatpush3.bf16.msra.mxu1 %v691_v9 }
 0x30f   :  { %1176 = vmatprep.subr.bf16.mxu1 %v690_v10 }
 0x312   :  { %1177 = vmatpush3.bf16.msra.mxu1 %v690_v10 }
 0x313   :  { %1178 = vmatprep.subr.bf16.mxu1 %v689_v11 }
 0x316   :  { %1179 = vmatpush3.bf16.msra.mxu1 %v689_v11 }
 0x317   :  { %1180 = vmatprep.subr.bf16.mxu1 %v688_v12 }
 0x31a   :  { %1181 = vmatpush3.bf16.msra.mxu1 %v688_v12 }
 0x31b   :  { %1182 = vmatprep.subr.bf16.mxu1 %v687_v13 }
 0x31e   :  { %1183 = vmatpush3.bf16.msra.mxu1 %v687_v13 }
 0x31f   :  { %1184 = vmatprep.subr.bf16.mxu1 %v686_v14 }
 0x322   :  { %1185 = vmatpush3.bf16.msra.mxu1 %v686_v14 }
 0x323   :  { %1186 = vmatprep.subr.bf16.mxu1 %v685_v15 }
 0x326   :  { %1187 = vmatpush3.bf16.msra.mxu1 %v685_v15 }
 0x329   :  { %1189 = vmatmul.mubr.bf16.vlgmr.msra.gmra.mxu1 %v1490_v46  ;;  %v1268_v46 = vld [vmem:[#allocation10 + $0x28] sm:$0xff]  }
 0x32a   :  { %1192 = vmatprep.mubr.bf16.mxu1 %v1492_v47  ;;  %1209 = vmatpush3.bf16.msra.mxu0 %v1268_v46  ;;  %v1269_v47 = vld [vmem:[#allocation10 + $0x20] sm:$0xff]  }
 0x32b   :  { %1210 = vmatprep.subr.bf16.mxu0 %v1409_v17 }
 0x32e   :  { %1211 = vmatpush3.bf16.msra.mxu0 %v1269_v47 }
 0x32f   :  { %1212 = vmatprep.subr.bf16.mxu0 %v1409_v17 }
 0x331   :  { %1193 = vmatmul.mubr.bf16.gmra.mxu1 %v1496_v48  ;;  %v1270_v48 = vld [vmem:[#allocation10 + $0x18] sm:$0xff]  }
 0x332   :  { %1196 = vmatprep.mubr.bf16.mxu1 %v1498_v49  ;;  %1213 = vmatpush3.bf16.msra.mxu0 %v1270_v48  ;;  %v1271_v49 = vld [vmem:[#allocation10 + $0x10] sm:$0xff]  }
 0x333   :  { %1214 = vmatprep.subr.bf16.mxu0 %v1409_v17 }
 0x336   :  { %1215 = vmatpush3.bf16.msra.mxu0 %v1271_v49 }
 0x337   :  { %1216 = vmatprep.subr.bf16.mxu0 %v1409_v17 }
 0x339   :  { %1197 = vmatmul.mubr.bf16.gmra.mxu1 %v1502_v50  ;;  %v1272_v50 = vld [vmem:[#allocation10 + $0x8] sm:$0xff]  }
 0x33a   :  { %1200 = vmatprep.mubr.bf16.mxu1 %v1504_v51  ;;  %1217 = vmatpush3.bf16.msra.mxu0 %v1272_v50  ;;  %v1273_v51 = vld [vmem:[#allocation10] sm:$0xff]  }
 0x33b   :  { %1218 = vmatprep.subr.bf16.mxu0 %v1409_v17 }
 0x33e   :  { %1219 = vmatpush3.bf16.msra.mxu0 %v1273_v51 }
 0x341   :  { %1201 = vmatmul.mubr.bf16.gmra.mxu1 %v1508_v52  ;;  %v695_v52 = vlaneseq }
 0x343   :  { %v696_v19 = vshrl.u32 %v695_v52, 7 }
 0x345   :  { %v697_v20 = vsub.s32 0, %v696_v19 }
 0x347   :  { %v698_v24 = vrot.slane %v1525_v21, %v697_v20 }
 0x3e9   :  { %v1190_v22 = vpop.f32.mrf.mxu1 }
 0x3ea   :  { %v743_v28 = vadd.f32 %v1190_v22, %v698_v24 }
 0x3eb   :  { %v734_v23 = vpop.f32.mrf.mxu1 }
 0x3ec   :  { %v735_v26 = vadd.f32 %v734_v23, %v698_v24  ;;  %v799_v35 = vmax.f32 %v743_v28, 0.0 }
 0x3ed   :  { %v1191_v25 = vpop.f32.mrf.mxu1 }
 0x3ee   :  { %v797_v31 = vmax.f32 %v735_v26, 0.0  ;;  %v746_v32 = vadd.f32 %v1191_v25, %v698_v24 }
 0x3ef   :  { %v737_v27 = vpop.f32.mrf.mxu1 }
 0x3f0   :  { %v738_v29 = vadd.f32 %v737_v27, %v698_v24  ;;  %v800_v39 = vmax.f32 %v746_v32, 0.0  ;;  %v834_v27 = vmax.f32 %v1525_v21, 0.0 }
 0x3f1   :  { %v1194_v30 = vpop.f32.mrf.mxu1 }
 0x3f2   :  { %v798_v33 = vmax.f32 %v738_v29, 0.0  ;;  %v759_v42 = vadd.f32 %v1194_v30, %v698_v24  ;;  %v835_v30 = vmul.f32 112.0, %v834_v27 }
 0x3f3   :  { %v750_v34 = vpop.f32.mrf.mxu1 }
 0x3f4   :  { %v813_v36 = vadd.f32 %v798_v33, %v797_v31  ;;  %v751_v37 = vadd.f32 %v750_v34, %v698_v24  ;;  %v803_v59 = vmax.f32 %v759_v42, 0.0 }
 0x3f5   :  { %v1195_v38 = vpop.f32.mrf.mxu1 }
 0x3f6   :  { %v814_v40 = vadd.f32 %v813_v36, %v799_v35  ;;  %v801_v43 = vmax.f32 %v751_v37, 0.0  ;;  %v762_v55 = vadd.f32 %v1195_v38, %v698_v24 }
 0x3f7   :  { %v753_v41 = vpop.f32.mrf.mxu1 }
 0x3f8   :  { %v815_v44 = vadd.f32 %v814_v40, %v800_v39  ;;  %v754_v45 = vadd.f32 %v753_v41, %v698_v24  ;;  %v804_v63 = vmax.f32 %v762_v55, 0.0 }
 0x3f9   :  { %v1198_v53 = vpop.f32.mrf.mxu1 }
 0x3fa   :  { %v816_v54 = vadd.f32 %v815_v44, %v801_v43  ;;  %v802_v56 = vmax.f32 %v754_v45, 0.0  ;;  %v775_v2 = vadd.f32 %v1198_v53, %v698_v24 }
 0x3fb   :  { %v766_v57 = vpop.f32.mrf.mxu1 }
 0x3fc   :  { %v817_v60 = vadd.f32 %v816_v54, %v802_v56  ;;  %v767_v61 = vadd.f32 %v766_v57, %v698_v24  ;;  %v807_v10 = vmax.f32 %v775_v2, 0.0 }
 0x3fd   :  { %v1199_v62 = vpop.f32.mrf.mxu1 }
 0x3fe   :  { %v818_v0 = vadd.f32 %v817_v60, %v803_v59  ;;  %v805_v3 = vmax.f32 %v767_v61, 0.0  ;;  %v778_v7 = vadd.f32 %v1199_v62, %v698_v24 }
 0x3ff   :  { %v769_v1 = vpop.f32.mrf.mxu1 }
 0x400   :  { %v819_v58 = vadd.f32 %v818_v0, %v804_v63  ;;  %v770_v4 = vadd.f32 %v769_v1, %v698_v24  ;;  %v808_v14 = vmax.f32 %v778_v7, 0.0 }
 0x401   :  { %v1202_v5 = vpop.f32.mrf.mxu1 }
 0x402   :  { %v820_v6 = vadd.f32 %v819_v58, %v805_v3  ;;  %v806_v8 = vmax.f32 %v770_v4, 0.0  ;;  %v791_v17 = vadd.f32 %v1202_v5, %v698_v24 }
 0x403   :  { %v782_v9 = vpop.f32.mrf.mxu1 }
 0x404   :  { %v821_v11 = vadd.f32 %v820_v6, %v806_v8  ;;  %v783_v12 = vadd.f32 %v782_v9, %v698_v24  ;;  %v811_v51 = vmax.f32 %v791_v17, 0.0 }
 0x405   :  { %v1203_v13 = vpop.f32.mrf.mxu1 }
 0x406   :  { %v822_v15 = vadd.f32 %v821_v11, %v807_v10  ;;  %v809_v18 = vmax.f32 %v783_v12, 0.0  ;;  %v794_v49 = vadd.f32 %v1203_v13, %v698_v24 }
 0x407   :  { %v785_v16 = vpop.f32.mrf.mxu1 }
 0x408   :  { %v823_v46 = vadd.f32 %v822_v15, %v808_v14  ;;  %v786_v47 = vadd.f32 %v785_v16, %v698_v24  ;;  %v812_v19 = vmax.f32 %v794_v49, 0.0  ;;  %v855_v24 = vld [vmem:[%s1542_s7] sm:$0x1] }
 0x40a   :  { %v824_v48 = vadd.f32 %v823_v46, %v809_v18  ;;  %v810_v50 = vmax.f32 %v786_v47, 0.0 }
 0x40c   :  { %v825_v52 = vadd.f32 %v824_v48, %v810_v50 }
 0x40e   :  { %v826_v20 = vadd.f32 %v825_v52, %v811_v51 }
 0x410   :  { %v827_v22 = vadd.f32 %v826_v20, %v812_v19 }
 0x412   :  { %v828_v23 = vrot.slane %v827_v22, 4 }
 0x414   :  { %v829_v25 = vadd.f32 %v828_v23, %v827_v22 }
 0x416   :  { %v830_v26 = vrot.slane %v829_v25, 2 }
 0x418   :  { %v831_v28 = vadd.f32 %v830_v26, %v829_v25 }
 0x41a   :  { %v832_v29 = vrot.slane %v831_v28, 1 }
 0x41c   :  { %v833_v31 = vadd.f32 %v832_v29, %v831_v28 }
 0x41e   :  { %v836_v32 = vsub.f32 %v833_v31, %v835_v30 }
 0x420   :  { %v837_v33 = vmul.f32 0.0625, %v836_v32 }
 0x422   :  { %v838_v34 = vpack.c.bf16 %v837_v33, %v837_v33 }
 0x424   :  { %1221 = vmatmul.mubr.bf16.vlgmr.msra.gmra.mxu0 %v838_v34 }
 0x4e4   :  { %v938_v35 = vpop.f32.mrf.mxu0 }
 0x4e5   :  { %v939_v36 = vadd.f32 %v938_v35, %v855_v24 }
 0x4e6   :  { %v1222_v37 = vpop.f32.mrf.mxu0 }
 0x4e7   :  { %944 = vst [vmem:[#allocation11] sm:$0x1] %v939_v36 }
 0x4e8   :  { %v941_v21 = vpop.f32.mrf.mxu0 }
 0x4e9   :  { %1385 = shalt.err (!%p1382_p1)
}
 0x4ea   :  { %954 = dma.vmem_to_hbm [thread:$0]  %s952_s10, 16, %s1543_s8, [#allocation4]   ;;  %v1223_v38 = vpop.f32.mrf.mxu0 }
 0x4eb   :  { %1400 = dma.done.wait [#allocation4], 16  }
 0x4ec   :  { %1401 = vsyncadd [#allocation4], 4294967280 }
 0x4ed   :  { %958 = vsyncpa [#allocation3], 1 }
 0x4ee   :  { %959 = vsyncpa [#allocation6], 1 }
 0x4ef   :  { %960 = vsyncpa [#allocation9], 1 }
 0x4f0   :  { %961 = vsyncpa [#allocation4], 1 }

</bundles_post_ra>
